<compile_context>
chip_gen: v7x
topology: tpu7x:2x2x1
jax: 0.10.0
libtpu: 0.0.40
codegen_flags: <defaults>
</compile_context>

<pallas_src>
import functools

import jax
import jax.numpy as jnp
from jax.experimental import pallas as pl
from jax.experimental.pallas import tpu as pltpu


def _round_up(n, m):
    return (n + m - 1) // m * m


def _cdiv(a, b):
    return (a + b - 1) // b


def _make_kernel(offsets, F, L):
    """offsets: static tuple of (row_start, out_dim, in_dim) per fused layer."""

    def kernel(x_ref, eps_ref, w_ref, b_ref, out_ref):
        def linear(h, idx):
            r0, out_d, in_d = offsets[idx]
            w = w_ref[r0:r0 + out_d, :in_d]          # [out, in]   (static slice)
            b = b_ref[r0:r0 + out_d, :]              # [out, 1] -> broadcast lanes
            return jnp.dot(w, h, preferred_element_type=jnp.float32) + b

        x = x_ref[...]                               # [F, TB]  batch on lanes

        # ---- encoder: Linear + ReLU x3 ----
        h = jnp.maximum(linear(x, 0), 0.0)
        h = jnp.maximum(linear(h, 1), 0.0)
        h = jnp.maximum(linear(h, 2), 0.0)

        # ---- fused mu|logvar head: one [2L, 32] matmul ----
        mulv = linear(h, 3)                          # [2L, TB]
        mu = mulv[:L, :]
        logvar = mulv[L:, :]

        # ---- reparameterize: z = mu + eps * exp(0.5 * logvar) ----
        z = mu + eps_ref[...] * jnp.exp(0.5 * logvar)

        # ---- decoder: Linear + ReLU x3, Linear + Sigmoid ----
        d = jnp.maximum(linear(z, 4), 0.0)
        d = jnp.maximum(linear(d, 5), 0.0)
        d = jnp.maximum(linear(d, 6), 0.0)
        dec = jax.nn.sigmoid(linear(d, 7))           # [F, TB]; exp/recip on EUP

        # ---- packed, fully lane-dense output: [decoded ; mu|logvar] ----
        out_ref[:F, :] = dec
        out_ref[F:, :] = mulv

    return kernel


@functools.partial(jax.jit, static_argnames=("max_block_cols",))
def linear_vae_forward(x, eps, params, *, max_block_cols=4096):
    """Fused LinearVAE forward.  Returns (decoded, mu, logvar).

    x:   [B, F] f32
    eps: [B, L] f32 reparameterization noise
    params: list of (W [out, in], b [out]) PyTorch-layout Linear params in the
            order enc1, enc2, enc3, fc_mu, fc_logvar, dec1, dec2, dec3, dec4.
    """
    B, F = x.shape
    L = eps.shape[1]

    (ew1, eb1), (ew2, eb2), (ew3, eb3), (mw, mb), (lw, lb), \
        (dw1, db1), (dw2, db2), (dw3, db3), (dw4, db4) = params

    # Fuse the mu / logvar heads into one [2L, 32] weight / [2L] bias.
    hw = jnp.concatenate([mw, lw], axis=0)
    hb = jnp.concatenate([mb, lb], axis=0)
    layers = [(ew1, eb1), (ew2, eb2), (ew3, eb3), (hw, hb),
              (dw1, db1), (dw2, db2), (dw3, db3), (dw4, db4)]

    # ---- pack all params into one weight slab + one bias slab (f32) ----
    wcols = _round_up(max(int(w.shape[1]) for w, _ in layers), 128)
    w_rows, b_rows, offsets, r = [], [], [], 0
    for w, b in layers:
        out_d, in_d = int(w.shape[0]), int(w.shape[1])
        rp = _round_up(out_d, 8)
        w_rows.append(jnp.zeros((rp, wcols), jnp.float32)
                      .at[:out_d, :in_d].set(w.astype(jnp.float32)))
        b_rows.append(jnp.zeros((rp, 1), jnp.float32)
                      .at[:out_d, 0].set(b.astype(jnp.float32).reshape(out_d)))
        offsets.append((r, out_d, in_d))
        r += rp
    w_slab = jnp.concatenate(w_rows, axis=0)          # [R, wcols]
    b_slab = jnp.concatenate(b_rows, axis=0)          # [R, 1]
    R = r

    # ---- batch-on-lanes tiling (TB = lane extent, always a multiple of 128) ----
    Bp0 = _round_up(B, 128)
    if Bp0 <= 128:
        TB, nblk = Bp0, 1
    else:
        # >= 2 grid steps so both v7x TensorCores get work (no-op on v5e/v6e).
        nblk = max(2, _cdiv(Bp0, max_block_cols))
        TB = _round_up(_cdiv(Bp0, nblk), 128)
        nblk = _cdiv(Bp0, TB)
    Bp = TB * nblk

    # Transpose to [features, batch] and pad the batch (lane) axis up to Bp.
    xt = jnp.pad(x.T.astype(jnp.float32), ((0, 0), (0, Bp - B)))
    et = jnp.pad(eps.T.astype(jnp.float32), ((0, 0), (0, Bp - B)))

    grid = (nblk,)
    in_specs = [
        pl.BlockSpec((F, TB), lambda i: (0, i)),       # x^T,  lane-tiled by batch
        pl.BlockSpec((L, TB), lambda i: (0, i)),       # eps^T
        pl.BlockSpec((R, wcols), lambda i: (0, 0)),    # weight slab, VMEM-resident
        pl.BlockSpec((R, 1), lambda i: (0, 0)),        # bias slab,   VMEM-resident
    ]
    out_specs = pl.BlockSpec((F + 2 * L, TB), lambda i: (0, i))
    out_shape = jax.ShapeDtypeStruct((F + 2 * L, Bp), jnp.float32)

    # ---- VMEM budget: x + eps + packed-out tiles (double-buffered) + slabs ----
    tile_bytes = 4 * TB * (F + L + F + 2 * L)
    slab_bytes = 4 * (R * wcols + R * 128)             # bias slab is lane-padded
    vmem_needed = 2 * (tile_bytes + slab_bytes)
    vmem_limit = None
    if vmem_needed > 12 * 2 ** 20:                      # v5e scoped default 16 MiB
        vmem_limit = int(min(60 * 2 ** 20, 2 * vmem_needed))  # v7x physical 64 MiB

    # Advisory cost estimate for XLA's scheduler.
    flops = 2 * Bp * sum(o * i for _, o, i in offsets)
    transcendentals = Bp * (L + 2 * F)                  # reparam exp + sigmoid exp/recip
    bytes_accessed = 4 * (R * wcols + R) + 4 * Bp * (F + L + F + 2 * L)
    cost = pl.CostEstimate(flops=int(flops), transcendentals=int(transcendentals),
                           bytes_accessed=int(bytes_accessed))

    out = pl.pallas_call(
        _make_kernel(tuple(offsets), F, L),
        out_shape=out_shape,
        grid=grid,
        in_specs=in_specs,
        out_specs=out_specs,
        compiler_params=pltpu.CompilerParams(
            dimension_semantics=("parallel",),
            vmem_limit_bytes=vmem_limit),
        cost_estimate=cost,
    )(xt, et, w_slab, b_slab)

    decoded = out[:F, :B].T
    mu = out[F:F + L, :B].T
    logvar = out[F + L:, :B].T
    return decoded, mu, logvar


def init_linear(key, fan_in, fan_out):
    """PyTorch-style U(-1/sqrt(fan_in), 1/sqrt(fan_in)) init, [out, in] layout."""
    kw, kb = jax.random.split(key)
    bound = 1.0 / jnp.sqrt(jnp.float32(fan_in))
    w = jax.random.uniform(kw, (fan_out, fan_in), jnp.float32, -bound, bound)
    b = jax.random.uniform(kb, (fan_out,), jnp.float32, -bound, bound)
    return w, b


def make_params(key, input_shape, latent_dim):
    dims = [
        # encoder
        (input_shape, 128), (128, 64), (64, 32),
        # heads
        (32, latent_dim), (32, latent_dim),
        # decoder
        (latent_dim, 32), (32, 64), (64, 128), (128, input_shape),
    ]
    keys = jax.random.split(key, len(dims))
    return [init_linear(k, fi, fo) for k, (fi, fo) in zip(keys, dims)]


if __name__ == "__main__":
    INPUT_SHAPE = 16   # feature dim of the flat input
    LATENT_DIM = 8
    BATCH = 4

    root = jax.random.PRNGKey(0)
    k_x, k_eps, k_params = jax.random.split(root, 3)

    x = jax.random.uniform(k_x, (BATCH, INPUT_SHAPE), jnp.float32)
    eps = jax.random.normal(k_eps, (BATCH, LATENT_DIM), jnp.float32)
    params = make_params(k_params, INPUT_SHAPE, LATENT_DIM)

    decoded, mu, logvar = linear_vae_forward(x, eps, params)
    jax.block_until_ready((decoded, mu, logvar))

    # Pure f32 reference mirroring the original PyTorch module.
    def ref_forward(x, eps, params):
        (ew1, eb1), (ew2, eb2), (ew3, eb3), (mw, mb), (lw, lb), \
            (dw1, db1), (dw2, db2), (dw3, db3), (dw4, db4) = params

        def lin(h, w, b):
            return h @ w.T + b

        h = jax.nn.relu(lin(x, ew1, eb1))
        h = jax.nn.relu(lin(h, ew2, eb2))
        h = jax.nn.relu(lin(h, ew3, eb3))
        mu = lin(h, mw, mb)
        logvar = lin(h, lw, lb)
        z = mu + eps * jnp.exp(0.5 * logvar)
        d = jax.nn.relu(lin(z, dw1, db1))
        d = jax.nn.relu(lin(d, dw2, db2))
        d = jax.nn.relu(lin(d, dw3, db3))
        return jax.nn.sigmoid(lin(d, dw4, db4)), mu, logvar

    r_dec, r_mu, r_lv = ref_forward(x, eps, params)

    assert decoded.shape == (BATCH, INPUT_SHAPE)
    assert mu.shape == (BATCH, LATENT_DIM)
    assert logvar.shape == (BATCH, LATENT_DIM)
    assert jnp.allclose(decoded, r_dec, atol=2e-2)
    assert jnp.allclose(mu, r_mu, atol=2e-2)
    assert jnp.allclose(logvar, r_lv, atol=2e-2)

    print("KERNEL_OK")
</pallas_src>

<mosaic_0001>
module attributes {stable_mosaic.version = 11 : i64} {
  func.func @kernel(%arg0: i32, %arg1: memref<16x128xf32, #tpu.memory_space<vmem>>, %arg2: memref<8x128xf32, #tpu.memory_space<vmem>>, %arg3: memref<480x128xf32, #tpu.memory_space<vmem>>, %arg4: memref<480x1xf32, #tpu.memory_space<vmem>>, %arg5: memref<32x128xf32, #tpu.memory_space<vmem>>) attributes {dimension_semantics = [#tpu.dimension_semantics<parallel>], iteration_bounds = array<i64: 1>, scalar_prefetch = 0 : i64, scratch_operands = 0 : i64, tpu.core_type = #tpu.core_type<tc>, window_params = [{transform_indices = @transform_0, window_bounds = array<i64: 16, 128>}, {transform_indices = @transform_1, window_bounds = array<i64: 8, 128>}, {pipeline_mode = #tpu.pipeline_mode<synchronous>, transform_indices = @transform_2, window_bounds = array<i64: 480, 128>}, {pipeline_mode = #tpu.pipeline_mode<synchronous>, transform_indices = @transform_3, window_bounds = array<i64: 480, 1>}, {transform_indices = @transform_4, window_bounds = array<i64: 32, 128>}]} {
    %c0 = arith.constant 0 : index
    %c0_0 = arith.constant 0 : index
    %0 = vector.load %arg1[%c0, %c0_0] : memref<16x128xf32, #tpu.memory_space<vmem>>, vector<16x128xf32>
    %c0_1 = arith.constant 0 : index
    %c0_2 = arith.constant 0 : index
    %1 = vector.load %arg3[%c0_1, %c0_2] : memref<480x128xf32, #tpu.memory_space<vmem>>, vector<128x16xf32>
    %c0_3 = arith.constant 0 : index
    %c0_4 = arith.constant 0 : index
    %2 = vector.load %arg4[%c0_3, %c0_4] : memref<480x1xf32, #tpu.memory_space<vmem>>, vector<128x1xf32>
    %cst = arith.constant dense<0.000000e+00> : vector<128x128xf32>
    %3 = tpu.matmul %1, %0, %cst {dimension_numbers = #tpu.dot_dimension_numbers<[1], [0], [0], [1], [0, 0, 1, 1], [], []>} : vector<128x16xf32>, vector<16x128xf32>, vector<128x128xf32> -> vector<128x128xf32>
    %4 = vector.broadcast %2 : vector<128x1xf32> to vector<128x128xf32>
    %5 = arith.addf %3, %4 : vector<128x128xf32>
    %cst_5 = arith.constant 0.000000e+00 : f32
    %6 = vector.broadcast %cst_5 : f32 to vector<128x128xf32>
    %7 = arith.maximumf %5, %6 : vector<128x128xf32>
    %c128 = arith.constant 128 : index
    %c0_6 = arith.constant 0 : index
    %8 = vector.load %arg3[%c128, %c0_6] : memref<480x128xf32, #tpu.memory_space<vmem>>, vector<64x128xf32>
    %c128_7 = arith.constant 128 : index
    %c0_8 = arith.constant 0 : index
    %9 = vector.load %arg4[%c128_7, %c0_8] : memref<480x1xf32, #tpu.memory_space<vmem>>, vector<64x1xf32>
    %cst_9 = arith.constant dense<0.000000e+00> : vector<64x128xf32>
    %10 = tpu.matmul %8, %7, %cst_9 {dimension_numbers = #tpu.dot_dimension_numbers<[1], [0], [0], [1], [0, 0, 1, 1], [], []>} : vector<64x128xf32>, vector<128x128xf32>, vector<64x128xf32> -> vector<64x128xf32>
    %11 = vector.broadcast %9 : vector<64x1xf32> to vector<64x128xf32>
    %12 = arith.addf %10, %11 : vector<64x128xf32>
    %cst_10 = arith.constant 0.000000e+00 : f32
    %13 = vector.broadcast %cst_10 : f32 to vector<64x128xf32>
    %14 = arith.maximumf %12, %13 : vector<64x128xf32>
    %c192 = arith.constant 192 : index
    %c0_11 = arith.constant 0 : index
    %15 = vector.load %arg3[%c192, %c0_11] : memref<480x128xf32, #tpu.memory_space<vmem>>, vector<32x64xf32>
    %c192_12 = arith.constant 192 : index
    %c0_13 = arith.constant 0 : index
    %16 = vector.load %arg4[%c192_12, %c0_13] : memref<480x1xf32, #tpu.memory_space<vmem>>, vector<32x1xf32>
    %cst_14 = arith.constant dense<0.000000e+00> : vector<32x128xf32>
    %17 = tpu.matmul %15, %14, %cst_14 {dimension_numbers = #tpu.dot_dimension_numbers<[1], [0], [0], [1], [0, 0, 1, 1], [], []>} : vector<32x64xf32>, vector<64x128xf32>, vector<32x128xf32> -> vector<32x128xf32>
    %18 = vector.broadcast %16 : vector<32x1xf32> to vector<32x128xf32>
    %19 = arith.addf %17, %18 : vector<32x128xf32>
    %cst_15 = arith.constant 0.000000e+00 : f32
    %20 = vector.broadcast %cst_15 : f32 to vector<32x128xf32>
    %21 = arith.maximumf %19, %20 : vector<32x128xf32>
    %c224 = arith.constant 224 : index
    %c0_16 = arith.constant 0 : index
    %22 = vector.load %arg3[%c224, %c0_16] : memref<480x128xf32, #tpu.memory_space<vmem>>, vector<16x32xf32>
    %c224_17 = arith.constant 224 : index
    %c0_18 = arith.constant 0 : index
    %23 = vector.load %arg4[%c224_17, %c0_18] : memref<480x1xf32, #tpu.memory_space<vmem>>, vector<16x1xf32>
    %cst_19 = arith.constant dense<0.000000e+00> : vector<16x128xf32>
    %24 = tpu.matmul %22, %21, %cst_19 {dimension_numbers = #tpu.dot_dimension_numbers<[1], [0], [0], [1], [0, 0, 1, 1], [], []>} : vector<16x32xf32>, vector<32x128xf32>, vector<16x128xf32> -> vector<16x128xf32>
    %25 = vector.broadcast %23 : vector<16x1xf32> to vector<16x128xf32>
    %26 = arith.addf %24, %25 : vector<16x128xf32>
    %27 = vector.extract_strided_slice %26 {offsets = [0, 0], sizes = [8, 128], strides = [1, 1]} : vector<16x128xf32> to vector<8x128xf32>
    %28 = vector.extract_strided_slice %26 {offsets = [8, 0], sizes = [8, 128], strides = [1, 1]} : vector<16x128xf32> to vector<8x128xf32>
    %c0_20 = arith.constant 0 : index
    %c0_21 = arith.constant 0 : index
    %29 = vector.load %arg2[%c0_20, %c0_21] : memref<8x128xf32, #tpu.memory_space<vmem>>, vector<8x128xf32>
    %cst_22 = arith.constant 5.000000e-01 : f32
    %30 = vector.broadcast %cst_22 : f32 to vector<8x128xf32>
    %31 = arith.mulf %30, %28 : vector<8x128xf32>
    %32 = math.exp %31 : vector<8x128xf32>
    %33 = arith.mulf %29, %32 : vector<8x128xf32>
    %34 = arith.addf %27, %33 : vector<8x128xf32>
    %c240 = arith.constant 240 : index
    %c0_23 = arith.constant 0 : index
    %35 = vector.load %arg3[%c240, %c0_23] : memref<480x128xf32, #tpu.memory_space<vmem>>, vector<32x8xf32>
    %c240_24 = arith.constant 240 : index
    %c0_25 = arith.constant 0 : index
    %36 = vector.load %arg4[%c240_24, %c0_25] : memref<480x1xf32, #tpu.memory_space<vmem>>, vector<32x1xf32>
    %cst_26 = arith.constant dense<0.000000e+00> : vector<32x128xf32>
    %37 = tpu.matmul %35, %34, %cst_26 {dimension_numbers = #tpu.dot_dimension_numbers<[1], [0], [0], [1], [0, 0, 1, 1], [], []>} : vector<32x8xf32>, vector<8x128xf32>, vector<32x128xf32> -> vector<32x128xf32>
    %38 = vector.broadcast %36 : vector<32x1xf32> to vector<32x128xf32>
    %39 = arith.addf %37, %38 : vector<32x128xf32>
    %cst_27 = arith.constant 0.000000e+00 : f32
    %40 = vector.broadcast %cst_27 : f32 to vector<32x128xf32>
    %41 = arith.maximumf %39, %40 : vector<32x128xf32>
    %c272 = arith.constant 272 : index
    %c0_28 = arith.constant 0 : index
    %42 = vector.load %arg3[%c272, %c0_28] : memref<480x128xf32, #tpu.memory_space<vmem>>, vector<64x32xf32>
    %c272_29 = arith.constant 272 : index
    %c0_30 = arith.constant 0 : index
    %43 = vector.load %arg4[%c272_29, %c0_30] : memref<480x1xf32, #tpu.memory_space<vmem>>, vector<64x1xf32>
    %cst_31 = arith.constant dense<0.000000e+00> : vector<64x128xf32>
    %44 = tpu.matmul %42, %41, %cst_31 {dimension_numbers = #tpu.dot_dimension_numbers<[1], [0], [0], [1], [0, 0, 1, 1], [], []>} : vector<64x32xf32>, vector<32x128xf32>, vector<64x128xf32> -> vector<64x128xf32>
    %45 = vector.broadcast %43 : vector<64x1xf32> to vector<64x128xf32>
    %46 = arith.addf %44, %45 : vector<64x128xf32>
    %cst_32 = arith.constant 0.000000e+00 : f32
    %47 = vector.broadcast %cst_32 : f32 to vector<64x128xf32>
    %48 = arith.maximumf %46, %47 : vector<64x128xf32>
    %c336 = arith.constant 336 : index
    %c0_33 = arith.constant 0 : index
    %49 = vector.load %arg3[%c336, %c0_33] : memref<480x128xf32, #tpu.memory_space<vmem>>, vector<128x64xf32>
    %c336_34 = arith.constant 336 : index
    %c0_35 = arith.constant 0 : index
    %50 = vector.load %arg4[%c336_34, %c0_35] : memref<480x1xf32, #tpu.memory_space<vmem>>, vector<128x1xf32>
    %cst_36 = arith.constant dense<0.000000e+00> : vector<128x128xf32>
    %51 = tpu.matmul %49, %48, %cst_36 {dimension_numbers = #tpu.dot_dimension_numbers<[1], [0], [0], [1], [0, 0, 1, 1], [], []>} : vector<128x64xf32>, vector<64x128xf32>, vector<128x128xf32> -> vector<128x128xf32>
    %52 = vector.broadcast %50 : vector<128x1xf32> to vector<128x128xf32>
    %53 = arith.addf %51, %52 : vector<128x128xf32>
    %cst_37 = arith.constant 0.000000e+00 : f32
    %54 = vector.broadcast %cst_37 : f32 to vector<128x128xf32>
    %55 = arith.maximumf %53, %54 : vector<128x128xf32>
    %c464 = arith.constant 464 : index
    %c0_38 = arith.constant 0 : index
    %56 = vector.load %arg3[%c464, %c0_38] : memref<480x128xf32, #tpu.memory_space<vmem>>, vector<16x128xf32>
    %c464_39 = arith.constant 464 : index
    %c0_40 = arith.constant 0 : index
    %57 = vector.load %arg4[%c464_39, %c0_40] : memref<480x1xf32, #tpu.memory_space<vmem>>, vector<16x1xf32>
    %cst_41 = arith.constant dense<0.000000e+00> : vector<16x128xf32>
    %58 = tpu.matmul %56, %55, %cst_41 {dimension_numbers = #tpu.dot_dimension_numbers<[1], [0], [0], [1], [0, 0, 1, 1], [], []>} : vector<16x128xf32>, vector<128x128xf32>, vector<16x128xf32> -> vector<16x128xf32>
    %59 = vector.broadcast %57 : vector<16x1xf32> to vector<16x128xf32>
    %60 = arith.addf %58, %59 : vector<16x128xf32>
    %61 = arith.negf %60 : vector<16x128xf32>
    %62 = math.exp %61 : vector<16x128xf32>
    %cst_42 = arith.constant 1.000000e+00 : f32
    %63 = vector.broadcast %cst_42 : f32 to vector<16x128xf32>
    %64 = arith.addf %63, %62 : vector<16x128xf32>
    %65 = arith.divf %63, %64 : vector<16x128xf32>
    %c0_43 = arith.constant 0 : index
    %c0_44 = arith.constant 0 : index
    %66 = vector.load %arg5[%c0_43, %c0_44] : memref<32x128xf32, #tpu.memory_space<vmem>>, vector<16x128xf32>
    tpu.vector_store %arg5[%c0_43, %c0_44], %65 {strides = array<i32>} : memref<32x128xf32, #tpu.memory_space<vmem>>, vector<16x128xf32>,
    %c16 = arith.constant 16 : index
    %c0_45 = arith.constant 0 : index
    %67 = vector.load %arg5[%c16, %c0_45] : memref<32x128xf32, #tpu.memory_space<vmem>>, vector<16x128xf32>
    tpu.vector_store %arg5[%c16, %c0_45], %26 {strides = array<i32>} : memref<32x128xf32, #tpu.memory_space<vmem>>, vector<16x128xf32>,
    return
  }
  func.func @transform_0(%arg0: i32) -> (i32, i32) {
    %c0_i32 = arith.constant 0 : i32
    %c0_i32_0 = arith.constant 0 : i32
    return %c0_i32, %arg0 : i32, i32
  }
  func.func @transform_1(%arg0: i32) -> (i32, i32) {
    %c0_i32 = arith.constant 0 : i32
    %c0_i32_0 = arith.constant 0 : i32
    return %c0_i32, %arg0 : i32, i32
  }
  func.func @transform_2(%arg0: i32) -> (i32, i32) {
    %c0_i32 = arith.constant 0 : i32
    %c0_i32_0 = arith.constant 0 : i32
    %c0_i32_1 = arith.constant 0 : i32
    return %c0_i32, %c0_i32_0 : i32, i32
  }
  func.func @transform_3(%arg0: i32) -> (i32, i32) {
    %c0_i32 = arith.constant 0 : i32
    %c0_i32_0 = arith.constant 0 : i32
    %c0_i32_1 = arith.constant 0 : i32
    return %c0_i32, %c0_i32_0 : i32, i32
  }
  func.func @transform_4(%arg0: i32) -> (i32, i32) {
    %c0_i32 = arith.constant 0 : i32
    %c0_i32_0 = arith.constant 0 : i32
    return %c0_i32, %arg0 : i32, i32
  }
}

</mosaic_0001>

<bundles_post_ra>
// kernel: linear_vae_forward.1
= control target key start
LH: loop header
LB: loop body
LE: loop exit
PB: predicated region body
PF: predicated region fallthrough
CT: control target
= control target key end

     0   :  { %v2003_v0 = vmov 0   ;;  %vm131_vm0 = vcmask 130048   ;;  %vm538_vm1 = vcmask 523264   ;;  %vm654_vm2 = vcmask 261120   ;;  %s2460_s3 = inlined_call_operand.vmem [shape: f32[480,1], index: 3, kind: input, shape index: {}]   ;;  %s2461_s0 = inlined_call_operand.vmem [shape: f32[16,128], index: 0, kind: input, shape index: {}]   ;;  %s2462_s2 = inlined_call_operand.vmem [shape: f32[480,128], index: 2, kind: input, shape index: {}]   ;;  %s2463_s4 = inlined_call_operand.vmem [shape: f32[32,128], index: 4, kind: output, shape index: {}]   ;;  %s2464_s1 = inlined_call_operand.vmem [shape: f32[8,128], index: 1, kind: input, shape index: {}]  }
   0x1   :  { %1992 = vset.pattern.permute.xlu1 %v2003_v0  ;;  %1991 = vset.pattern.permute.xlu0 %v2003_v0  ;;  %v37_v1 = vld [vmem:[%s2460_s3 + $0x10] sm:$0xff]  ;;  %v35_v2 = vld [vmem:[%s2460_s3] sm:$0xff]  ;;  %v18_v4 = vld [vmem:[%s2461_s0 + $0x8] sm:$0xff]  ;;  %vm770_vm3 = vcmask 64512  }
   0x2   :  { %v17_v3 = vld [vmem:[%s2461_s0] sm:$0xff]  ;;  %63 = vperm.xlu1 %1992, %v37_v1   ;;  %53 = vperm.xlu0 %1991, %v35_v2   ;;  %v38_v6 = vld [vmem:[%s2460_s3 + $0x18] sm:$0xff]  ;;  %v36_v8 = vld [vmem:[%s2460_s3 + $0x8] sm:$0xff] }
   0x3   :  { %v1874_v5 = vpack.c.bf16 %v18_v4, %v17_v3  ;;  %v19_v7 = vld [vmem:[%s2462_s2] sm:$0xff]  ;;  %v20_v9 = vld [vmem:[%s2462_s2 + $0x8] sm:$0xff]  ;;  %v21_v11 = vld [vmem:[%s2462_s2 + $0x10] sm:$0xff] }
   0x4   :  { %1670 = vmatprep.mubr.msk.f32.mxu1 %vm131_vm0, %v19_v7  ;;  %v40_v10 = vld [vmem:[%s2460_s3 + $0x28] sm:$0xff]  ;;  %v39_v12 = vld [vmem:[%s2460_s3 + $0x20] sm:$0xff]  ;;  %v22_v13 = vld [vmem:[%s2462_s2 + $0x18] sm:$0xff] }
   0x5   :  { %1875 = vmatprep.subr.bf16.mxu1 %v1874_v5  ;;  %v42_v14 = vld [vmem:[%s2460_s3 + $0x38] sm:$0xff]  ;;  %v23_v15 = vld [vmem:[%s2462_s2 + $0x20] sm:$0xff]  ;;  %v41_v16 = vld [vmem:[%s2460_s3 + $0x30] sm:$0xff] }
   0x6   :  { %1877 = vmatpush3.bf16.msra.mxu1 %v1874_v5  ;;  %68 = vperm.xlu1 %1992, %v38_v6   ;;  %v24_v17 = vld [vmem:[%s2462_s2 + $0x28] sm:$0xff]  ;;  %v25_v19 = vld [vmem:[%s2462_s2 + $0x30] sm:$0xff]  ;;  %v43_v20 = vld [vmem:[%s2460_s3 + $0x40] sm:$0xff] }
   0x7   :  { %58 = vperm.xlu0 %1991, %v36_v8   ;;  %v44_v18 = vld [vmem:[%s2460_s3 + $0x48] sm:$0xff]  ;;  %v26_v21 = vld [vmem:[%s2462_s2 + $0x38] sm:$0xff]  ;;  %v27_v23 = vld [vmem:[%s2462_s2 + $0x40] sm:$0xff] }
   0x8   :  { %v46_v22 = vld [vmem:[%s2460_s3 + $0x58] sm:$0xff]  ;;  %v45_v24 = vld [vmem:[%s2460_s3 + $0x50] sm:$0xff]  ;;  %v28_v25 = vld [vmem:[%s2462_s2 + $0x48] sm:$0xff] }
   0x9   :  { %1671 = vmatmul.mubr.msk.f32.vlgmr.msra.gmra.mrb[0].mxu1 %vm131_vm0, %v20_v9  ;;  %v48_v26 = vld [vmem:[%s2460_s3 + $0x68] sm:$0xff]  ;;  %v29_v27 = vld [vmem:[%s2462_s2 + $0x50] sm:$0xff]  ;;  %v47_v28 = vld [vmem:[%s2460_s3 + $0x60] sm:$0xff] }
   0xa   :  { %78 = vperm.xlu1 %1992, %v40_v10   ;;  %1673 = vmatprep.mubr.msk.f32.mxu1 %vm131_vm0, %v21_v11  ;;  %v30_v29 = vld [vmem:[%s2462_s2 + $0x58] sm:$0xff]  ;;  %v31_v31 = vld [vmem:[%s2462_s2 + $0x60] sm:$0xff]  ;;  %v49_v32 = vld [vmem:[%s2460_s3 + $0x70] sm:$0xff] }
   0xb   :  { %73 = vperm.xlu0 %1991, %v39_v12   ;;  %v50_v30 = vld [vmem:[%s2460_s3 + $0x78] sm:$0xff]  ;;  %v32_v33 = vld [vmem:[%s2462_s2 + $0x68] sm:$0xff]  ;;  %v33_v35 = vld [vmem:[%s2462_s2 + $0x70] sm:$0xff] }
   0xc   :  { %v350_v34 = vld [vmem:[%s2460_s3 + $0x88] sm:$0xff]  ;;  %v349_v36 = vld [vmem:[%s2460_s3 + $0x80] sm:$0xff]  ;;  %v34_v37 = vld [vmem:[%s2462_s2 + $0x78] sm:$0xff] }
   0xd   :  { %1674 = vmatmul.mubr.msk.f32.gmra.mrb[2].mxu1 %vm131_vm0, %v22_v13  ;;  %v352_v38 = vld [vmem:[%s2460_s3 + $0x98] sm:$0xff]  ;;  %v351_v39 = vld [vmem:[%s2460_s3 + $0x90] sm:$0xff]  ;;  %v354_v40 = vld [vmem:[%s2460_s3 + $0xa8] sm:$0xff] }
   0xe   :  { %88 = vperm.xlu1 %1992, %v42_v14   ;;  %1676 = vmatprep.mubr.msk.f32.mxu1 %vm131_vm0, %v23_v15  ;;  %v353_v41 = vld [vmem:[%s2460_s3 + $0xa0] sm:$0xff]  ;;  %v356_v42 = vld [vmem:[%s2460_s3 + $0xb8] sm:$0xff]  ;;  %v355_v43 = vld [vmem:[%s2460_s3 + $0xb0] sm:$0xff] }
   0xf   :  { %83 = vperm.xlu0 %1991, %v41_v16   ;;  %v515_v44 = vld [vmem:[%s2460_s3 + $0xc8] sm:$0xff]  ;;  %v514_v45 = vld [vmem:[%s2460_s3 + $0xc0] sm:$0xff]  ;;  %v517_v46 = vld [vmem:[%s2460_s3 + $0xd8] sm:$0xff] }
  0x10   :  { %v516_v47 = vld [vmem:[%s2460_s3 + $0xd0] sm:$0xff]  ;;  %v642_v48 = vld [vmem:[%s2460_s3 + $0xe0] sm:$0xff]  ;;  %v643_v49 = vld [vmem:[%s2460_s3 + $0xe8] sm:$0xff] }
  0x11   :  { %1677 = vmatmul.mubr.msk.f32.gmra.mrb[4].mxu1 %vm131_vm0, %v24_v17  ;;  %v747_v50 = vld [vmem:[%s2460_s3 + $0xf8] sm:$0xff]  ;;  %v746_v51 = vld [vmem:[%s2460_s3 + $0xf0] sm:$0xff]  ;;  %v749_v52 = vld [vmem:[%s2460_s3 + $0x108] sm:$0xff] }
  0x12   :  { %98 = vperm.xlu1 %1992, %v44_v18   ;;  %1679 = vmatprep.mubr.msk.f32.mxu1 %vm131_vm0, %v25_v19  ;;  %v748_v53 = vld [vmem:[%s2460_s3 + $0x100] sm:$0xff]  ;;  %v881_v54 = vld [vmem:[%s2460_s3 + $0x118] sm:$0xff]  ;;  %v880_v55 = vld [vmem:[%s2460_s3 + $0x110] sm:$0xff] }
  0x13   :  { %93 = vperm.xlu0 %1991, %v43_v20   ;;  %v883_v56 = vld [vmem:[%s2460_s3 + $0x128] sm:$0xff]  ;;  %v882_v57 = vld [vmem:[%s2460_s3 + $0x120] sm:$0xff]  ;;  %v885_v58 = vld [vmem:[%s2460_s3 + $0x138] sm:$0xff] }
  0x14   :  { %v884_v59 = vld [vmem:[%s2460_s3 + $0x130] sm:$0xff]  ;;  %v887_v60 = vld [vmem:[%s2460_s3 + $0x148] sm:$0xff]  ;;  %v886_v61 = vld [vmem:[%s2460_s3 + $0x140] sm:$0xff] }
  0x15   :  { %1680 = vmatmul.mubr.msk.f32.gmra.mrb[6].mxu1 %vm131_vm0, %v26_v21  ;;  %v1082_v62 = vld [vmem:[%s2460_s3 + $0x158] sm:$0xff]  ;;  %v1081_v63 = vld [vmem:[%s2460_s3 + $0x150] sm:$0xff]  ;;  %v1084_v0 = vld [vmem:[%s2460_s3 + $0x168] sm:$0xff] }
  0x16   :  { %108 = vperm.xlu1 %1992, %v46_v22   ;;  %1682 = vmatprep.mubr.msk.f32.mxu1 %vm131_vm0, %v27_v23  ;;  %v1083_v1 = vld [vmem:[%s2460_s3 + $0x160] sm:$0xff]  ;;  %v1086_v2 = vld [vmem:[%s2460_s3 + $0x178] sm:$0xff]  ;;  %v1085_v3 = vld [vmem:[%s2460_s3 + $0x170] sm:$0xff] }
  0x17   :  { %103 = vperm.xlu0 %1991, %v45_v24   ;;  %v1088_v4 = vld [vmem:[%s2460_s3 + $0x188] sm:$0xff]  ;;  %v1087_v5 = vld [vmem:[%s2460_s3 + $0x180] sm:$0xff]  ;;  %v1090_v6 = vld [vmem:[%s2460_s3 + $0x198] sm:$0xff] }
  0x18   :  { %v1089_v7 = vld [vmem:[%s2460_s3 + $0x190] sm:$0xff]  ;;  %v1092_v8 = vld [vmem:[%s2460_s3 + $0x1a8] sm:$0xff]  ;;  %v1091_v9 = vld [vmem:[%s2460_s3 + $0x1a0] sm:$0xff] }
  0x19   :  { %1683 = vmatmul.mubr.msk.f32.gmra.mrb[8].mxu1 %vm131_vm0, %v28_v25  ;;  %v1094_v10 = vld [vmem:[%s2460_s3 + $0x1b8] sm:$0xff]  ;;  %v1093_v11 = vld [vmem:[%s2460_s3 + $0x1b0] sm:$0xff]  ;;  %v1096_v12 = vld [vmem:[%s2460_s3 + $0x1c8] sm:$0xff] }
  0x1a   :  { %118 = vperm.xlu1 %1992, %v48_v26   ;;  %1685 = vmatprep.mubr.msk.f32.mxu1 %vm131_vm0, %v29_v27  ;;  %v1095_v13 = vld [vmem:[%s2460_s3 + $0x1c0] sm:$0xff]  ;;  %v1389_v14 = vld [vmem:[%s2460_s3 + $0x1d8] sm:$0xff]  ;;  %v1388_v15 = vld [vmem:[%s2460_s3 + $0x1d0] sm:$0xff] }
  0x1b   :  { %113 = vperm.xlu0 %1991, %v47_v28   ;;  %v341_v16 = vld [vmem:[%s2462_s2 + $0x80] sm:$0xff] }
  0x1d   :  { %1686 = vmatmul.mubr.msk.f32.gmra.mrb[10].mxu1 %vm131_vm0, %v30_v29 }
  0x1e   :  { %128 = vperm.xlu1 %1992, %v50_v30   ;;  %1688 = vmatprep.mubr.msk.f32.mxu1 %vm131_vm0, %v31_v31 }
  0x1f   :  { %123 = vperm.xlu0 %1991, %v49_v32  }
  0x21   :  { %1689 = vmatmul.mubr.msk.f32.gmra.mrb[12].mxu1 %vm131_vm0, %v32_v33 }
  0x22   :  { %364 = vperm.xlu1 %1992, %v350_v34   ;;  %1691 = vmatprep.mubr.msk.f32.mxu1 %vm131_vm0, %v33_v35 }
  0x23   :  { %359 = vperm.xlu0 %1991, %v349_v36  }
  0x25   :  { %1692 = vmatmul.mubr.msk.f32.gmra.mrb[14].mxu1 %vm131_vm0, %v34_v37 }
  0x26   :  { %374 = vperm.xlu1 %1992, %v352_v38   ;;  %1726 = vmatprep.mubr.f32.mxu1 %v341_v16 }
  0x27   :  { %369 = vperm.xlu0 %1991, %v351_v39  }
  0x2a   :  { %384 = vperm.xlu1 %1992, %v354_v40  }
  0x2b   :  { %379 = vperm.xlu0 %1991, %v353_v41  }
  0x2e   :  { %394 = vperm.xlu1 %1992, %v356_v42  }
  0x2f   :  { %389 = vperm.xlu0 %1991, %v355_v43  }
  0x32   :  { %525 = vperm.xlu1 %1992, %v515_v44  }
  0x33   :  { %520 = vperm.xlu0 %1991, %v514_v45  }
  0x36   :  { %535 = vperm.xlu1 %1992, %v517_v46  }
  0x37   :  { %530 = vperm.xlu0 %1991, %v516_v47  }
  0x3a   :  { %646 = vperm.xlu1 %1992, %v642_v48  }
  0x3b   :  { %651 = vperm.xlu0 %1991, %v643_v49  }
  0x3e   :  { %757 = vperm.xlu1 %1992, %v747_v50  }
  0x3f   :  { %752 = vperm.xlu0 %1991, %v746_v51  }
  0x42   :  { %767 = vperm.xlu1 %1992, %v749_v52  }
  0x43   :  { %762 = vperm.xlu0 %1991, %v748_v53  }
  0x46   :  { %895 = vperm.xlu1 %1992, %v881_v54  }
  0x47   :  { %890 = vperm.xlu0 %1991, %v880_v55  }
  0x4a   :  { %905 = vperm.xlu1 %1992, %v883_v56  }
  0x4b   :  { %900 = vperm.xlu0 %1991, %v882_v57  }
  0x4e   :  { %915 = vperm.xlu1 %1992, %v885_v58  }
  0x4f   :  { %910 = vperm.xlu0 %1991, %v884_v59  }
  0x52   :  { %925 = vperm.xlu1 %1992, %v887_v60  }
  0x53   :  { %920 = vperm.xlu0 %1991, %v886_v61  }
  0x56   :  { %1104 = vperm.xlu1 %1992, %v1082_v62  }
  0x57   :  { %1099 = vperm.xlu0 %1991, %v1081_v63  }
  0x5a   :  { %1114 = vperm.xlu1 %1992, %v1084_v0  }
  0x5b   :  { %1109 = vperm.xlu0 %1991, %v1083_v1  }
  0x5e   :  { %1124 = vperm.xlu1 %1992, %v1086_v2  }
  0x5f   :  { %1119 = vperm.xlu0 %1991, %v1085_v3  }
  0x62   :  { %1134 = vperm.xlu1 %1992, %v1088_v4  }
  0x63   :  { %1129 = vperm.xlu0 %1991, %v1087_v5  }
  0x66   :  { %1144 = vperm.xlu1 %1992, %v1090_v6  }
  0x67   :  { %1139 = vperm.xlu0 %1991, %v1089_v7  }
  0x6a   :  { %1154 = vperm.xlu1 %1992, %v1092_v8  }
  0x6b   :  { %1149 = vperm.xlu0 %1991, %v1091_v9  }
  0x6e   :  { %1164 = vperm.xlu1 %1992, %v1094_v10  }
  0x6f   :  { %1159 = vperm.xlu0 %1991, %v1093_v11  }
  0x72   :  { %1174 = vperm.xlu1 %1992, %v1096_v12  }
  0x73   :  { %1169 = vperm.xlu0 %1991, %v1095_v13  }
  0x76   :  { %1397 = vperm.xlu1 %1992, %v1389_v14  }
  0x77   :  { %1392 = vperm.xlu0 %1991, %v1388_v15  }
  0x81   :  { %v64_v17 = vpop.permute.xlu1 %63  ;;  %v54_v18 = vpop.permute.xlu0 %53 }
  0x85   :  { %v69_v19 = vpop.permute.xlu1 %68 }
  0x86   :  { %v59_v20 = vpop.permute.xlu0 %58 }
  0x89   :  { %v79_v21 = vpop.permute.xlu1 %78 }
  0x8a   :  { %v74_v22 = vpop.permute.xlu0 %73 }
  0x8d   :  { %v89_v28 = vpop.permute.xlu1 %88 }
  0x8e   :  { %v84_v31 = vpop.permute.xlu0 %83 }
  0x91   :  { %v99_v41 = vpop.permute.xlu1 %98 }
  0x92   :  { %v94_v44 = vpop.permute.xlu0 %93 }
  0x95   :  { %v109_v53 = vpop.permute.xlu1 %108 }
  0x96   :  { %v104_v56 = vpop.permute.xlu0 %103 }
  0x99   :  { %v119_v2 = vpop.permute.xlu1 %118 }
  0x9a   :  { %v114_v5 = vpop.permute.xlu0 %113 }
  0x9d   :  { %v129_v14 = vpop.permute.xlu1 %128 }
  0xdc   :  { %v1672_v23 = vpop.f32.mrb[0].mxu1 }
  0xdd   :  { %v252_v24 = vadd.f32 %v1672_v23, %v59_v20  ;;  %v246_v25 = vpop.f32.mrb[1].mxu1 }
  0xde   :  { %v247_v26 = vadd.f32 %v246_v25, %v54_v18  ;;  %v342_v25 = vld [vmem:[%s2462_s2 + $0x88] sm:$0xff] }
  0xdf   :  { %v326_v27 = vmax.f32 %v252_v24, 0.0 }
  0xe0   :  { %v325_v29 = vmax.f32 %v247_v26, 0.0  ;;  %v1675_v30 = vpop.f32.mrb[2].mxu1  ;;  %v343_v26 = vld [vmem:[%s2462_s2 + $0x90] sm:$0xff] }
  0xe1   :  { %v262_v32 = vadd.f32 %v1675_v30, %v69_v19  ;;  %v256_v33 = vpop.f32.mrb[3].mxu1  ;;  %v347_v30 = vld [vmem:[%s2462_s2 + $0xb0] sm:$0xff] }
  0xe2   :  { %v1878_v34 = vpack.c.bf16 %v326_v27, %v325_v29  ;;  %v257_v35 = vadd.f32 %v256_v33, %v64_v17  ;;  %v124_v17 = vpop.permute.xlu0 %123  ;;  %v344_v27 = vld [vmem:[%s2462_s2 + $0x98] sm:$0xff]  ;;  %v346_v29 = vld [vmem:[%s2462_s2 + $0xa8] sm:$0xff]  ;;  %v365_v33 = vpop.permute.xlu1 %364 }
  0xe3   :  { %v328_v36 = vmax.f32 %v262_v32, 0.0  ;;  %v510_v32 = vld [vmem:[%s2462_s2 + $0xc0] sm:$0xff] }
  0xe4   :  { %v327_v37 = vmax.f32 %v257_v35, 0.0  ;;  %v1678_v38 = vpop.f32.mrb[4].mxu1  ;;  %1879 = vmatprep.subr.bf16.mxu1 %v1878_v34 }
  0xe5   :  { %v272_v39 = vadd.f32 %v1678_v38, %v79_v21  ;;  %v266_v40 = vpop.f32.mrb[5].mxu1  ;;  %1881 = vmatpush3.bf16.msra.mxu1 %v1878_v34 }
  0xe6   :  { %v1882_v42 = vpack.c.bf16 %v328_v36, %v327_v37  ;;  %v267_v43 = vadd.f32 %v266_v40, %v74_v22  ;;  %v360_v34 = vpop.permute.xlu0 %359  ;;  %v375_v35 = vpop.permute.xlu1 %374 }
  0xe7   :  { %v330_v45 = vmax.f32 %v272_v39, 0.0 }
  0xe8   :  { %v329_v46 = vmax.f32 %v267_v43, 0.0  ;;  %v1681_v47 = vpop.f32.mrb[6].mxu1  ;;  %1883 = vmatprep.subr.bf16.mxu1 %v1882_v42 }
  0xe9   :  { %v282_v48 = vadd.f32 %v1681_v47, %v89_v28  ;;  %v276_v49 = vpop.f32.mrb[7].mxu1  ;;  %1885 = vmatpush3.bf16.msra.mxu1 %v1882_v42  ;;  %v345_v28 = vld [vmem:[%s2462_s2 + $0xa0] sm:$0xff] }
  0xea   :  { %v1886_v50 = vpack.c.bf16 %v330_v45, %v329_v46  ;;  %v277_v51 = vadd.f32 %v276_v49, %v84_v31  ;;  %v348_v31 = vld [vmem:[%s2462_s2 + $0xb8] sm:$0xff]  ;;  %v370_v37 = vpop.permute.xlu0 %369  ;;  %v385_v46 = vpop.permute.xlu1 %384 }
  0xeb   :  { %v332_v52 = vmax.f32 %v282_v48, 0.0 }
  0xec   :  { %v331_v54 = vmax.f32 %v277_v51, 0.0  ;;  %v1684_v55 = vpop.f32.mrb[8].mxu1  ;;  %1887 = vmatprep.subr.bf16.mxu1 %v1886_v50 }
  0xed   :  { %v292_v57 = vadd.f32 %v1684_v55, %v99_v41  ;;  %v286_v58 = vpop.f32.mrb[9].mxu1  ;;  %1889 = vmatpush3.bf16.msra.mxu1 %v1886_v50 }
  0xee   :  { %v1890_v59 = vpack.c.bf16 %v332_v52, %v331_v54  ;;  %v287_v60 = vadd.f32 %v286_v58, %v94_v44  ;;  %v380_v49 = vpop.permute.xlu0 %379  ;;  %v395_v58 = vpop.permute.xlu1 %394 }
  0xef   :  { %v334_v61 = vmax.f32 %v292_v57, 0.0 }
  0xf0   :  { %v333_v62 = vmax.f32 %v287_v60, 0.0  ;;  %v1687_v63 = vpop.f32.mrb[10].mxu1  ;;  %1891 = vmatprep.subr.bf16.mxu1 %v1890_v59 }
  0xf1   :  { %v302_v0 = vadd.f32 %v1687_v63, %v109_v53  ;;  %v296_v1 = vpop.f32.mrb[11].mxu1  ;;  %1893 = vmatpush3.bf16.msra.mxu1 %v1890_v59 }
  0xf2   :  { %v1894_v3 = vpack.c.bf16 %v334_v61, %v333_v62  ;;  %v297_v4 = vadd.f32 %v296_v1, %v104_v56  ;;  %v390_v61 = vpop.permute.xlu0 %389 }
  0xf3   :  { %v336_v6 = vmax.f32 %v302_v0, 0.0 }
  0xf4   :  { %v335_v7 = vmax.f32 %v297_v4, 0.0  ;;  %v1690_v8 = vpop.f32.mrb[12].mxu1  ;;  %1895 = vmatprep.subr.bf16.mxu1 %v1894_v3 }
  0xf5   :  { %v312_v9 = vadd.f32 %v1690_v8, %v119_v2  ;;  %v306_v10 = vpop.f32.mrb[13].mxu1  ;;  %1897 = vmatpush3.bf16.msra.mxu1 %v1894_v3  ;;  %v640_v8 = vld [vmem:[%s2462_s2 + $0xe0] sm:$0xff] }
  0xf6   :  { %v1898_v11 = vpack.c.bf16 %v336_v6, %v335_v7  ;;  %v307_v12 = vadd.f32 %v306_v10, %v114_v5  ;;  %v511_v5 = vld [vmem:[%s2462_s2 + $0xc8] sm:$0xff]  ;;  %v512_v6 = vld [vmem:[%s2462_s2 + $0xd0] sm:$0xff]  ;;  %v513_v7 = vld [vmem:[%s2462_s2 + $0xd8] sm:$0xff]  ;;  %v521_v10 = vpop.permute.xlu0 %520 }
  0xf7   :  { %v338_v13 = vmax.f32 %v312_v9, 0.0  ;;  %v526_v9 = vpop.permute.xlu1 %525 }
  0xf8   :  { %v337_v15 = vmax.f32 %v307_v12, 0.0  ;;  %v1693_v16 = vpop.f32.mrb[14].mxu1  ;;  %1899 = vmatprep.subr.bf16.mxu1 %v1898_v11 }
  0xf9   :  { %v322_v18 = vadd.f32 %v1693_v16, %v129_v14  ;;  %v316_v19 = vpop.f32.mrb[15].mxu1  ;;  %1901 = vmatpush3.bf16.msra.mxu1 %v1898_v11 }
  0xfa   :  { %v1902_v20 = vpack.c.bf16 %v338_v13, %v337_v15  ;;  %v317_v21 = vadd.f32 %v316_v19, %v124_v17  ;;  %v531_v19 = vpop.permute.xlu0 %530 }
  0xfb   :  { %v340_v22 = vmax.f32 %v322_v18, 0.0  ;;  %v536_v16 = vpop.permute.xlu1 %535 }
  0xfc   :  { %v339_v23 = vmax.f32 %v317_v21, 0.0  ;;  %1903 = vmatprep.subr.bf16.mxu1 %v1902_v20 }
  0xfd   :  { %1905 = vmatpush3.bf16.msra.mxu1 %v1902_v20 }
  0xfe   :  { %v1906_v24 = vpack.c.bf16 %v340_v22, %v339_v23 }
 0x100   :  { %1907 = vmatprep.subr.bf16.mxu1 %v1906_v24 }
 0x101   :  { %1909 = vmatpush3.bf16.msra.mxu1 %v1906_v24 }
 0x104   :  { %1727 = vmatmul.mubr.f32.vlgmr.msra.gmra.mrb[16].mxu1 %v342_v25 }
 0x105   :  { %1729 = vmatprep.mubr.f32.mxu1 %v343_v26 }
 0x108   :  { %1730 = vmatmul.mubr.f32.gmra.mrb[18].mxu1 %v344_v27  ;;  %v641_v27 = vld [vmem:[%s2462_s2 + $0xe8] sm:$0xff] }
 0x109   :  { %1732 = vmatprep.mubr.f32.mxu1 %v345_v28  ;;  %v742_v28 = vld [vmem:[%s2462_s2 + $0xf0] sm:$0xff] }
 0x10a   :  { %1773 = vmatprep.mubr.msk.f32.mxu0 %vm770_vm3, %v742_v28 }
 0x10c   :  { %1733 = vmatmul.mubr.f32.gmra.mrb[20].mxu1 %v346_v29  ;;  %v652_v29 = vpop.permute.xlu0 %651 }
 0x10d   :  { %1735 = vmatprep.mubr.f32.mxu1 %v347_v30 }
 0x110   :  { %1736 = vmatmul.mubr.f32.gmra.mrb[22].mxu1 %v348_v31  ;;  %v647_v31 = vpop.permute.xlu1 %646 }
 0x111   :  { %1754 = vmatprep.mubr.msk.f32.mxu1 %vm538_vm1, %v510_v32 }
 0x1d7   :  { %v1728_v36 = vpop.f32.mrb[16].mxu1 }
 0x1d8   :  { %v469_v38 = vadd.f32 %v1728_v36, %v365_v33  ;;  %v463_v39 = vpop.f32.mrb[17].mxu1 }
 0x1d9   :  { %v464_v40 = vadd.f32 %v463_v39, %v360_v34 }
 0x1da   :  { %v503_v41 = vmax.f32 %v469_v38, 0.0 }
 0x1db   :  { %v502_v42 = vmax.f32 %v464_v40, 0.0  ;;  %v1731_v43 = vpop.f32.mrb[18].mxu1 }
 0x1dc   :  { %v479_v44 = vadd.f32 %v1731_v43, %v375_v35  ;;  %v473_v45 = vpop.f32.mrb[19].mxu1  ;;  %v745_v43 = vld [vmem:[%s2462_s2 + $0x108] sm:$0xff] }
 0x1dd   :  { %v1910_v47 = vpack.c.bf16 %v503_v41, %v502_v42  ;;  %v474_v48 = vadd.f32 %v473_v45, %v370_v37  ;;  %v736_v37 = vld [vmem:[%s2464_s1] sm:$0xff]  ;;  %v743_v41 = vld [vmem:[%s2462_s2 + $0xf8] sm:$0xff]  ;;  %v758_v45 = vpop.permute.xlu1 %757 }
 0x1de   :  { %v505_v50 = vmax.f32 %v479_v44, 0.0  ;;  %v744_v42 = vld [vmem:[%s2462_s2 + $0x100] sm:$0xff]  ;;  %v872_v44 = vld [vmem:[%s2462_s2 + $0x110] sm:$0xff] }
 0x1df   :  { %v504_v51 = vmax.f32 %v474_v48, 0.0  ;;  %v1734_v52 = vpop.f32.mrb[20].mxu1  ;;  %1911 = vmatprep.subr.bf16.mxu1 %v1910_v47 }
 0x1e0   :  { %v489_v53 = vadd.f32 %v1734_v52, %v385_v46  ;;  %v483_v54 = vpop.f32.mrb[21].mxu1  ;;  %1913 = vmatpush3.bf16.msra.mxu1 %v1910_v47  ;;  %v753_v46 = vpop.permute.xlu0 %752 }
 0x1e1   :  { %v1914_v55 = vpack.c.bf16 %v505_v50, %v504_v51  ;;  %v484_v56 = vadd.f32 %v483_v54, %v380_v49  ;;  %v768_v52 = vpop.permute.xlu1 %767 }
 0x1e2   :  { %v507_v57 = vmax.f32 %v489_v53, 0.0 }
 0x1e3   :  { %v506_v59 = vmax.f32 %v484_v56, 0.0  ;;  %v1737_v60 = vpop.f32.mrb[22].mxu1  ;;  %1915 = vmatprep.subr.bf16.mxu1 %v1914_v55 }
 0x1e4   :  { %v499_v62 = vadd.f32 %v1737_v60, %v395_v58  ;;  %v493_v63 = vpop.f32.mrb[23].mxu1  ;;  %1917 = vmatpush3.bf16.msra.mxu1 %v1914_v55  ;;  %v763_v55 = vpop.permute.xlu0 %762 }
 0x1e5   :  { %v1918_v0 = vpack.c.bf16 %v507_v57, %v506_v59  ;;  %v494_v1 = vadd.f32 %v493_v63, %v390_v61  ;;  %v873_v63 = vld [vmem:[%s2462_s2 + $0x118] sm:$0xff] }
 0x1e6   :  { %v509_v2 = vmax.f32 %v499_v62, 0.0 }
 0x1e7   :  { %v508_v3 = vmax.f32 %v494_v1, 0.0  ;;  %1919 = vmatprep.subr.bf16.mxu1 %v1918_v0  ;;  %v875_v1 = vld [vmem:[%s2462_s2 + $0x128] sm:$0xff] }
 0x1e8   :  { %1921 = vmatpush3.bf16.msra.mxu1 %v1918_v0  ;;  %v874_v0 = vld [vmem:[%s2462_s2 + $0x120] sm:$0xff] }
 0x1e9   :  { %v1922_v4 = vpack.c.bf16 %v509_v2, %v508_v3  ;;  %v876_v2 = vld [vmem:[%s2462_s2 + $0x130] sm:$0xff]  ;;  %v877_v3 = vld [vmem:[%s2462_s2 + $0x138] sm:$0xff] }
 0x1eb   :  { %1923 = vmatprep.subr.bf16.mxu1 %v1922_v4 }
 0x1ec   :  { %1925 = vmatpush3.bf16.msra.mxu1 %v1922_v4  ;;  %v878_v4 = vld [vmem:[%s2462_s2 + $0x140] sm:$0xff] }
 0x1ef   :  { %1755 = vmatmul.mubr.msk.f32.vlgmr.msra.gmra.mrb[24].mxu1 %vm538_vm1, %v511_v5  ;;  %v879_v5 = vld [vmem:[%s2462_s2 + $0x148] sm:$0xff] }
 0x1f0   :  { %1757 = vmatprep.mubr.msk.f32.mxu1 %vm538_vm1, %v512_v6  ;;  %v1065_v6 = vld [vmem:[%s2462_s2 + $0x150] sm:$0xff] }
 0x1f3   :  { %1758 = vmatmul.mubr.msk.f32.gmra.mrb[26].mxu1 %vm538_vm1, %v513_v7  ;;  %v896_v7 = vpop.permute.xlu1 %895 }
 0x1f4   :  { %1768 = vmatprep.mubr.msk.f32.mxu1 %vm654_vm2, %v640_v8  ;;  %v891_v8 = vpop.permute.xlu0 %890 }
 0x2c2   :  { %v1756_v11 = vpop.f32.mrb[24].mxu1 }
 0x2c3   :  { %v623_v12 = vadd.f32 %v1756_v11, %v526_v9  ;;  %v617_v13 = vpop.f32.mrb[25].mxu1  ;;  %v906_v9 = vpop.permute.xlu1 %905 }
 0x2c4   :  { %v618_v14 = vadd.f32 %v617_v13, %v521_v10  ;;  %v901_v11 = vpop.permute.xlu0 %900 }
 0x2c5   :  { %v637_v15 = vmax.f32 %v623_v12, 0.0 }
 0x2c6   :  { %v636_v17 = vmax.f32 %v618_v14, 0.0  ;;  %v1759_v18 = vpop.f32.mrb[26].mxu1 }
 0x2c7   :  { %v633_v20 = vadd.f32 %v1759_v18, %v536_v16  ;;  %v627_v21 = vpop.f32.mrb[27].mxu1 }
 0x2c8   :  { %v1926_v22 = vpack.c.bf16 %v637_v15, %v636_v17  ;;  %v628_v23 = vadd.f32 %v627_v21, %v531_v19 }
 0x2c9   :  { %v639_v24 = vmax.f32 %v633_v20, 0.0  ;;  %v916_v20 = vpop.permute.xlu1 %915 }
 0x2ca   :  { %v638_v25 = vmax.f32 %v628_v23, 0.0  ;;  %1927 = vmatprep.subr.bf16.mxu1 %v1926_v22  ;;  %v911_v23 = vpop.permute.xlu0 %910 }
 0x2cb   :  { %1929 = vmatpush3.bf16.msra.mxu1 %v1926_v22 }
 0x2cc   :  { %v1930_v26 = vpack.c.bf16 %v639_v24, %v638_v25 }
 0x2ce   :  { %1931 = vmatprep.subr.bf16.mxu1 %v1930_v26 }
 0x2cf   :  { %1933 = vmatpush3.bf16.msra.mxu1 %v1930_v26 }
 0x2d2   :  { %1769 = vmatmul.mubr.msk.f32.vlgmr.msra.gmra.mrb[28].mxu1 %vm654_vm2, %v641_v27 }
 0x3a5   :  { %v1770_v30 = vpop.f32.mrb[28].mxu1 }
 0x3a6   :  { %v733_v32 = vadd.f32 %v1770_v30, %v652_v29  ;;  %v727_v33 = vpop.f32.mrb[29].mxu1 }
 0x3a7   :  { %v728_v34 = vadd.f32 %v727_v33, %v647_v31 }
 0x3a8   :  { %v737_v35 = vmul.f32 0.5, %v733_v32  ;;  %1490 = vst [vmem:[%s2463_s4 + $0x18] sm:$0xff] %v733_v32  ;;  %v926_v32 = vpop.permute.xlu1 %925 }
 0x3a9   :  { %1489 = vst [vmem:[%s2463_s4 + $0x10] sm:$0xff] %v728_v34 }
 0x3aa   :  { %v738_v36 = vmul.f32 1.442695, %v737_v35  ;;  %v921_v35 = vpop.permute.xlu0 %920 }
 0x3ac   :  { %1993 = vpow2.f32 %v738_v36 }
 0x3b6   :  { %v1994_v38 = vpop.eup %1993 }
 0x3b7   :  { %v740_v39 = vmul.f32 %v1994_v38, %v736_v37 }
 0x3b9   :  { %v741_v40 = vadd.f32 %v740_v39, %v728_v34 }
 0x3bb   :  { %1771 = vmatprep.subr.mxu0 %v741_v40 }
 0x3bc   :  { %1772 = vmatpush3.msra.mxu0 %v741_v40 }
 0x3bd   :  { %1774 = vmatmul.mubr.msk.f32.vlgmr.msra.gmra.mrb[0].mxu0 %vm770_vm3, %v743_v41 }
 0x3be   :  { %1776 = vmatprep.mubr.msk.f32.mxu0 %vm770_vm3, %v744_v42 }
 0x3c1   :  { %1777 = vmatmul.mubr.msk.f32.gmra.mrb[2].mxu0 %vm770_vm3, %v745_v43  ;;  %v1066_v43 = vld [vmem:[%s2462_s2 + $0x158] sm:$0xff] }
 0x3c2   :  { %1787 = vmatprep.mubr.msk.f32.mxu0 %vm654_vm2, %v872_v44  ;;  %v1067_v44 = vld [vmem:[%s2462_s2 + $0x160] sm:$0xff] }
 0x490   :  { %v1775_v47 = vpop.f32.mrb[0].mxu0 }
 0x491   :  { %v855_v48 = vadd.f32 %v1775_v47, %v758_v45  ;;  %v849_v49 = vpop.f32.mrb[1].mxu0  ;;  %v1068_v45 = vld [vmem:[%s2462_s2 + $0x168] sm:$0xff]  ;;  %v1070_v47 = vld [vmem:[%s2462_s2 + $0x178] sm:$0xff] }
 0x492   :  { %v850_v50 = vadd.f32 %v849_v49, %v753_v46  ;;  %v1069_v46 = vld [vmem:[%s2462_s2 + $0x170] sm:$0xff]  ;;  %v1072_v49 = vld [vmem:[%s2462_s2 + $0x188] sm:$0xff] }
 0x493   :  { %v869_v51 = vmax.f32 %v855_v48, 0.0  ;;  %v1071_v48 = vld [vmem:[%s2462_s2 + $0x180] sm:$0xff] }
 0x494   :  { %v868_v53 = vmax.f32 %v850_v50, 0.0  ;;  %v1778_v54 = vpop.f32.mrb[2].mxu0  ;;  %v1073_v50 = vld [vmem:[%s2462_s2 + $0x190] sm:$0xff] }
 0x495   :  { %v865_v56 = vadd.f32 %v1778_v54, %v768_v52  ;;  %v859_v57 = vpop.f32.mrb[3].mxu0  ;;  %v1075_v52 = vld [vmem:[%s2462_s2 + $0x1a0] sm:$0xff]  ;;  %v1077_v54 = vld [vmem:[%s2462_s2 + $0x1b0] sm:$0xff] }
 0x496   :  { %v1934_v58 = vpack.c.bf16 %v869_v51, %v868_v53  ;;  %v860_v59 = vadd.f32 %v859_v57, %v763_v55  ;;  %v1074_v51 = vld [vmem:[%s2462_s2 + $0x198] sm:$0xff]  ;;  %v1076_v53 = vld [vmem:[%s2462_s2 + $0x1a8] sm:$0xff] }
 0x497   :  { %v871_v60 = vmax.f32 %v865_v56, 0.0  ;;  %v1078_v55 = vld [vmem:[%s2462_s2 + $0x1b8] sm:$0xff]  ;;  %v1079_v56 = vld [vmem:[%s2462_s2 + $0x1c0] sm:$0xff]  ;;  %v1080_v57 = vld [vmem:[%s2462_s2 + $0x1c8] sm:$0xff] }
 0x498   :  { %v870_v61 = vmax.f32 %v860_v59, 0.0  ;;  %1935 = vmatprep.subr.bf16.mxu0 %v1934_v58  ;;  %v1105_v59 = vpop.permute.xlu1 %1104 }
 0x499   :  { %1937 = vmatpush3.bf16.msra.mxu0 %v1934_v58  ;;  %v1386_v58 = vld [vmem:[%s2462_s2 + $0x1d0] sm:$0xff] }
 0x49a   :  { %v1938_v62 = vpack.c.bf16 %v871_v60, %v870_v61  ;;  %v1100_v60 = vpop.permute.xlu0 %1099 }
 0x49c   :  { %1939 = vmatprep.subr.bf16.mxu0 %v1938_v62  ;;  %v1115_v61 = vpop.permute.xlu1 %1114 }
 0x49d   :  { %1941 = vmatpush3.bf16.msra.mxu0 %v1938_v62 }
 0x49e   :  { %v1110_v62 = vpop.permute.xlu0 %1109 }
 0x4a0   :  { %1788 = vmatmul.mubr.msk.f32.vlgmr.msra.gmra.mrb[4].mxu0 %vm654_vm2, %v873_v63  ;;  %v1125_v63 = vpop.permute.xlu1 %1124 }
 0x4a1   :  { %1790 = vmatprep.mubr.msk.f32.mxu0 %vm654_vm2, %v874_v0 }
 0x4a2   :  { %v1120_v0 = vpop.permute.xlu0 %1119 }
 0x4a4   :  { %1791 = vmatmul.mubr.msk.f32.gmra.mrb[6].mxu0 %vm654_vm2, %v875_v1 }
 0x4a5   :  { %1793 = vmatprep.mubr.msk.f32.mxu0 %vm654_vm2, %v876_v2 }
 0x4a8   :  { %1794 = vmatmul.mubr.msk.f32.gmra.mrb[8].mxu0 %vm654_vm2, %v877_v3 }
 0x4a9   :  { %1796 = vmatprep.mubr.msk.f32.mxu0 %vm654_vm2, %v878_v4 }
 0x4ac   :  { %1797 = vmatmul.mubr.msk.f32.gmra.mrb[10].mxu0 %vm654_vm2, %v879_v5 }
 0x4ad   :  { %1815 = vmatprep.mubr.msk.f32.mxu0 %vm538_vm1, %v1065_v6  ;;  %v1135_v6 = vpop.permute.xlu1 %1134 }
 0x573   :  { %v1789_v10 = vpop.f32.mrb[4].mxu0 }
 0x574   :  { %v1024_v12 = vadd.f32 %v1789_v10, %v896_v7  ;;  %v1018_v13 = vpop.f32.mrb[5].mxu0 }
 0x575   :  { %v1019_v14 = vadd.f32 %v1018_v13, %v891_v8 }
 0x576   :  { %v1058_v15 = vmax.f32 %v1024_v12, 0.0 }
 0x577   :  { %v1057_v16 = vmax.f32 %v1019_v14, 0.0  ;;  %v1792_v17 = vpop.f32.mrb[6].mxu0 }
 0x578   :  { %v1034_v18 = vadd.f32 %v1792_v17, %v906_v9  ;;  %v1028_v19 = vpop.f32.mrb[7].mxu0  ;;  %v1130_v9 = vpop.permute.xlu0 %1129 }
 0x579   :  { %v1942_v21 = vpack.c.bf16 %v1058_v15, %v1057_v16  ;;  %v1029_v22 = vadd.f32 %v1028_v19, %v901_v11  ;;  %v1145_v19 = vpop.permute.xlu1 %1144 }
 0x57a   :  { %v1060_v24 = vmax.f32 %v1034_v18, 0.0 }
 0x57b   :  { %v1059_v25 = vmax.f32 %v1029_v22, 0.0  ;;  %v1795_v26 = vpop.f32.mrb[8].mxu0  ;;  %1943 = vmatprep.subr.bf16.mxu0 %v1942_v21 }
 0x57c   :  { %v1044_v27 = vadd.f32 %v1795_v26, %v916_v20  ;;  %v1038_v28 = vpop.f32.mrb[9].mxu0  ;;  %1945 = vmatpush3.bf16.msra.mxu0 %v1942_v21  ;;  %v1140_v22 = vpop.permute.xlu0 %1139 }
 0x57d   :  { %v1946_v29 = vpack.c.bf16 %v1060_v24, %v1059_v25  ;;  %v1039_v30 = vadd.f32 %v1038_v28, %v911_v23 }
 0x57e   :  { %v1062_v31 = vmax.f32 %v1044_v27, 0.0 }
 0x57f   :  { %v1061_v33 = vmax.f32 %v1039_v30, 0.0  ;;  %v1798_v34 = vpop.f32.mrb[10].mxu0  ;;  %1947 = vmatprep.subr.bf16.mxu0 %v1946_v29 }
 0x580   :  { %v1054_v36 = vadd.f32 %v1798_v34, %v926_v32  ;;  %v1048_v37 = vpop.f32.mrb[11].mxu0  ;;  %1949 = vmatpush3.bf16.msra.mxu0 %v1946_v29  ;;  %v1150_v34 = vpop.permute.xlu0 %1149 }
 0x581   :  { %v1950_v38 = vpack.c.bf16 %v1062_v31, %v1061_v33  ;;  %v1049_v39 = vadd.f32 %v1048_v37, %v921_v35  ;;  %v1155_v31 = vpop.permute.xlu1 %1154 }
 0x582   :  { %v1064_v40 = vmax.f32 %v1054_v36, 0.0 }
 0x583   :  { %v1063_v41 = vmax.f32 %v1049_v39, 0.0  ;;  %1951 = vmatprep.subr.bf16.mxu0 %v1950_v38 }
 0x584   :  { %1953 = vmatpush3.bf16.msra.mxu0 %v1950_v38 }
 0x585   :  { %v1954_v42 = vpack.c.bf16 %v1064_v40, %v1063_v41 }
 0x587   :  { %1955 = vmatprep.subr.bf16.mxu0 %v1954_v42 }
 0x588   :  { %1957 = vmatpush3.bf16.msra.mxu0 %v1954_v42 }
 0x58b   :  { %1816 = vmatmul.mubr.msk.f32.vlgmr.msra.gmra.mrb[12].mxu0 %vm538_vm1, %v1066_v43 }
 0x58c   :  { %1818 = vmatprep.mubr.msk.f32.mxu0 %vm538_vm1, %v1067_v44  ;;  %v1165_v44 = vpop.permute.xlu1 %1164 }
 0x58f   :  { %1819 = vmatmul.mubr.msk.f32.gmra.mrb[14].mxu0 %vm538_vm1, %v1068_v45 }
 0x590   :  { %1821 = vmatprep.mubr.msk.f32.mxu0 %vm538_vm1, %v1069_v46 }
 0x593   :  { %1822 = vmatmul.mubr.msk.f32.gmra.mrb[16].mxu0 %vm538_vm1, %v1070_v47  ;;  %v1160_v47 = vpop.permute.xlu0 %1159 }
 0x594   :  { %1824 = vmatprep.mubr.msk.f32.mxu0 %vm538_vm1, %v1071_v48 }
 0x597   :  { %1825 = vmatmul.mubr.msk.f32.gmra.mrb[18].mxu0 %vm538_vm1, %v1072_v49 }
 0x598   :  { %1827 = vmatprep.mubr.msk.f32.mxu0 %vm538_vm1, %v1073_v50 }
 0x59b   :  { %1828 = vmatmul.mubr.msk.f32.gmra.mrb[20].mxu0 %vm538_vm1, %v1074_v51 }
 0x59c   :  { %1830 = vmatprep.mubr.msk.f32.mxu0 %vm538_vm1, %v1075_v52 }
 0x59f   :  { %1831 = vmatmul.mubr.msk.f32.gmra.mrb[22].mxu0 %vm538_vm1, %v1076_v53 }
 0x5a0   :  { %1833 = vmatprep.mubr.msk.f32.mxu0 %vm538_vm1, %v1077_v54 }
 0x5a3   :  { %1834 = vmatmul.mubr.msk.f32.gmra.mrb[24].mxu0 %vm538_vm1, %v1078_v55 }
 0x5a4   :  { %1836 = vmatprep.mubr.msk.f32.mxu0 %vm538_vm1, %v1079_v56  ;;  %v1175_v56 = vpop.permute.xlu1 %1174 }
 0x5a7   :  { %1837 = vmatmul.mubr.msk.f32.gmra.mrb[26].mxu0 %vm538_vm1, %v1080_v57 }
 0x5a8   :  { %1871 = vmatprep.mubr.f32.mxu0 %v1386_v58 }
 0x65e   :  { %v1817_v1 = vpop.f32.mrb[12].mxu0 }
 0x65f   :  { %v1297_v2 = vadd.f32 %v1817_v1, %v1105_v59  ;;  %v1291_v3 = vpop.f32.mrb[13].mxu0  ;;  %v1170_v59 = vpop.permute.xlu0 %1169 }
 0x660   :  { %v1292_v4 = vadd.f32 %v1291_v3, %v1100_v60  ;;  %v1387_v3 = vld [vmem:[%s2462_s2 + $0x1d8] sm:$0xff] }
 0x661   :  { %v1371_v5 = vmax.f32 %v1297_v2, 0.0 }
 0x662   :  { %v1370_v7 = vmax.f32 %v1292_v4, 0.0  ;;  %v1820_v8 = vpop.f32.mrb[14].mxu0  ;;  %v1398_v4 = vpop.permute.xlu1 %1397 }
 0x663   :  { %v1307_v10 = vadd.f32 %v1820_v8, %v1115_v61  ;;  %v1301_v11 = vpop.f32.mrb[15].mxu0 }
 0x664   :  { %v1958_v12 = vpack.c.bf16 %v1371_v5, %v1370_v7  ;;  %v1302_v13 = vadd.f32 %v1301_v11, %v1110_v62 }
 0x665   :  { %v1373_v14 = vmax.f32 %v1307_v10, 0.0 }
 0x666   :  { %v1372_v15 = vmax.f32 %v1302_v13, 0.0  ;;  %v1823_v16 = vpop.f32.mrb[16].mxu0  ;;  %1959 = vmatprep.subr.bf16.mxu0 %v1958_v12 }
 0x667   :  { %v1317_v17 = vadd.f32 %v1823_v16, %v1125_v63  ;;  %v1311_v18 = vpop.f32.mrb[17].mxu0  ;;  %1961 = vmatpush3.bf16.msra.mxu0 %v1958_v12 }
 0x668   :  { %v1962_v20 = vpack.c.bf16 %v1373_v14, %v1372_v15  ;;  %v1312_v21 = vadd.f32 %v1311_v18, %v1120_v0 }
 0x669   :  { %v1375_v23 = vmax.f32 %v1317_v17, 0.0 }
 0x66a   :  { %v1374_v24 = vmax.f32 %v1312_v21, 0.0  ;;  %v1826_v25 = vpop.f32.mrb[18].mxu0  ;;  %1963 = vmatprep.subr.bf16.mxu0 %v1962_v20 }
 0x66b   :  { %v1327_v26 = vadd.f32 %v1826_v25, %v1135_v6  ;;  %v1321_v27 = vpop.f32.mrb[19].mxu0  ;;  %1965 = vmatpush3.bf16.msra.mxu0 %v1962_v20  ;;  %v1393_v6 = vpop.permute.xlu0 %1392 }
 0x66c   :  { %v1966_v28 = vpack.c.bf16 %v1375_v23, %v1374_v24  ;;  %v1322_v29 = vadd.f32 %v1321_v27, %v1130_v9 }
 0x66d   :  { %v1377_v30 = vmax.f32 %v1327_v26, 0.0 }
 0x66e   :  { %v1376_v32 = vmax.f32 %v1322_v29, 0.0  ;;  %v1829_v33 = vpop.f32.mrb[20].mxu0  ;;  %1967 = vmatprep.subr.bf16.mxu0 %v1966_v28 }
 0x66f   :  { %v1337_v35 = vadd.f32 %v1829_v33, %v1145_v19  ;;  %v1331_v36 = vpop.f32.mrb[21].mxu0  ;;  %1969 = vmatpush3.bf16.msra.mxu0 %v1966_v28 }
 0x670   :  { %v1970_v37 = vpack.c.bf16 %v1377_v30, %v1376_v32  ;;  %v1332_v38 = vadd.f32 %v1331_v36, %v1140_v22 }
 0x671   :  { %v1379_v39 = vmax.f32 %v1337_v35, 0.0 }
 0x672   :  { %v1378_v40 = vmax.f32 %v1332_v38, 0.0  ;;  %v1832_v41 = vpop.f32.mrb[22].mxu0  ;;  %1971 = vmatprep.subr.bf16.mxu0 %v1970_v37 }
 0x673   :  { %v1347_v42 = vadd.f32 %v1832_v41, %v1155_v31  ;;  %v1341_v43 = vpop.f32.mrb[23].mxu0  ;;  %1973 = vmatpush3.bf16.msra.mxu0 %v1970_v37 }
 0x674   :  { %v1974_v45 = vpack.c.bf16 %v1379_v39, %v1378_v40  ;;  %v1342_v46 = vadd.f32 %v1341_v43, %v1150_v34 }
 0x675   :  { %v1381_v48 = vmax.f32 %v1347_v42, 0.0 }
 0x676   :  { %v1380_v49 = vmax.f32 %v1342_v46, 0.0  ;;  %v1835_v50 = vpop.f32.mrb[24].mxu0  ;;  %1975 = vmatprep.subr.bf16.mxu0 %v1974_v45 }
 0x677   :  { %v1357_v51 = vadd.f32 %v1835_v50, %v1165_v44  ;;  %v1351_v52 = vpop.f32.mrb[25].mxu0  ;;  %1977 = vmatpush3.bf16.msra.mxu0 %v1974_v45 }
 0x678   :  { %v1978_v53 = vpack.c.bf16 %v1381_v48, %v1380_v49  ;;  %v1352_v54 = vadd.f32 %v1351_v52, %v1160_v47 }
 0x679   :  { %v1383_v55 = vmax.f32 %v1357_v51, 0.0 }
 0x67a   :  { %v1382_v57 = vmax.f32 %v1352_v54, 0.0  ;;  %v1838_v58 = vpop.f32.mrb[26].mxu0  ;;  %1979 = vmatprep.subr.bf16.mxu0 %v1978_v53 }
 0x67b   :  { %v1367_v60 = vadd.f32 %v1838_v58, %v1175_v56  ;;  %v1361_v61 = vpop.f32.mrb[27].mxu0  ;;  %1981 = vmatpush3.bf16.msra.mxu0 %v1978_v53 }
 0x67c   :  { %v1982_v62 = vpack.c.bf16 %v1383_v55, %v1382_v57  ;;  %v1362_v63 = vadd.f32 %v1361_v61, %v1170_v59 }
 0x67d   :  { %v1385_v0 = vmax.f32 %v1367_v60, 0.0 }
 0x67e   :  { %v1384_v1 = vmax.f32 %v1362_v63, 0.0  ;;  %1983 = vmatprep.subr.bf16.mxu0 %v1982_v62 }
 0x67f   :  { %1985 = vmatpush3.bf16.msra.mxu0 %v1982_v62 }
 0x680   :  { %v1986_v2 = vpack.c.bf16 %v1385_v0, %v1384_v1 }
 0x682   :  { %1987 = vmatprep.subr.bf16.mxu0 %v1986_v2 }
 0x683   :  { %1989 = vmatpush3.bf16.msra.mxu0 %v1986_v2 }
 0x686   :  { %1872 = vmatmul.mubr.f32.vlgmr.msra.gmra.mrb[28].mxu0 %v1387_v3 }
 0x759   :  { %v1873_v5 = vpop.f32.mrb[28].mxu0 }
 0x75a   :  { %v1472_v7 = vadd.f32 %v1873_v5, %v1398_v4  ;;  %v1466_v8 = vpop.f32.mrb[29].mxu0 }
 0x75b   :  { %v1467_v9 = vadd.f32 %v1466_v8, %v1393_v6 }
 0x75c   :  { %v1546_v10 = vmul.f32 -1.442695, %v1472_v7 }
 0x75d   :  { %v1545_v11 = vmul.f32 -1.442695, %v1467_v9 }
 0x75e   :  { %1995 = vpow2.f32 %v1546_v10 }
 0x75f   :  { %1997 = vpow2.f32 %v1545_v11 }
 0x768   :  { %v1996_v12 = vpop.eup %1995 }
 0x769   :  { %v1998_v13 = vpop.eup %1997  ;;  %v1482_v14 = vadd.f32 1.0, %v1996_v12 }
 0x76a   :  { %v1481_v15 = vadd.f32 1.0, %v1998_v13 }
 0x76b   :  { %1999 = vrcp.f32 %v1482_v14 }
 0x76c   :  { %2001 = vrcp.f32 %v1481_v15 }
 0x775   :  { %v2000_v16 = vpop.eup %1999 }
 0x776   :  { %v2002_v17 = vpop.eup %2001  ;;  %1488 = vst [vmem:[%s2463_s4 + $0x8] sm:$0xff] %v2000_v16 }
 0x777   :  { %1487 = vst [vmem:[%s2463_s4] sm:$0xff] %v2002_v17 }

</bundles_post_ra>
